<compile_context>
chip_gen: v7x
topology: tpu7x:2x2x1
jax: 0.10.0
libtpu: 0.0.40
codegen_flags: <defaults>
</compile_context>

<pallas_src>
import jax
import jax.numpy as jnp
from jax import lax
from jax.experimental import pallas as pl
from jax.experimental.pallas import tpu as pltpu


def _critic_kernel(x_ref, w_ref, b_ref, o_ref):
    # x: (TILE_B, H) VMEM    w: (H, 2) VMEM (resident)    b: (2,) SMEM scalars
    x = x_ref[...]
    w = w_ref[...]
    # Single fused MXU matmul for both heads -> (TILE_B, 2), f32 accumulation.
    acc = jnp.dot(x, w, preferred_element_type=jnp.float32)
    # Bias add from SMEM scalars: column 0 -> reward bias, column 1 -> rating bias.
    b0 = b_ref[0]
    b1 = b_ref[1]
    col = lax.broadcasted_iota(jnp.int32, acc.shape, 1)
    bias = jnp.where(col == 0, b0, b1)
    o_ref[...] = (acc + bias).astype(o_ref.dtype)


def critic_forward(base_output, w_reward, b_reward, w_rating, b_rating):
    """Pallas equivalent of Critic.forward.

    base_output: (B, H) float32
    w_reward, w_rating: (1, H) float32   (PyTorch nn.Linear weight layout)
    b_reward, b_rating: (1,)   float32
    returns: (value_reward, value_rating), each (B, 1) float32
    """
    B, H = base_output.shape

    # Fuse the two heads: (H, 2) pre-transposed weight, (2,) bias. This is
    # free layout plumbing in the XLA wrapper (no in-kernel transpose).
    w_fused = jnp.concatenate([w_reward, w_rating], axis=0).T          # (H, 2)
    b_fused = jnp.concatenate([b_reward, b_rating], axis=0)            # (2,)

    # Pick a batch tile: aim for ~8 MiB per input buffer (so 2x double-buffer
    # plus weights stays well inside v7x's 32 MiB scoped VMEM), multiple of 8.
    bytes_per_row = H * 4
    target_rows = max(8, (8 * 1024 * 1024) // bytes_per_row)
    target_rows = max(8, (target_rows // 8) * 8)
    tile_b = B if B <= target_rows else target_rows                    # full dim is always legal
    grid = (pl.cdiv(B, tile_b),)

    # Explicit VMEM budget: double-buffered x tile + output + weights + slack,
    # capped below v7x physical VMEM.
    vmem_limit = int(min(96 * 1024 * 1024,
                         max(8 * 1024 * 1024,
                             4 * tile_b * bytes_per_row + (4 << 20))))

    out = pl.pallas_call(
        _critic_kernel,
        out_shape=jax.ShapeDtypeStruct((B, 2), base_output.dtype),
        grid=grid,
        in_specs=[
            pl.BlockSpec((tile_b, H), lambda i: (i, 0)),               # x: batch-tiled, pipelined
            pl.BlockSpec((H, 2), lambda i: (0, 0)),                    # fused weight: VMEM-resident
            pl.BlockSpec(memory_space=pltpu.MemorySpace.SMEM),         # biases: SMEM scalars
        ],
        out_specs=pl.BlockSpec((tile_b, 2), lambda i: (i, 0)),         # lane-dense fused output
        compiler_params=pltpu.CompilerParams(
            dimension_semantics=("parallel",),                         # shard batch across TCs (v7x)
            vmem_limit_bytes=vmem_limit,
        ),
    )(base_output, w_fused, b_fused)

    value_reward = out[:, 0:1]
    value_rating = out[:, 1:2]
    return value_reward, value_rating


if __name__ == "__main__":
    # Small, deterministic setup consistent with the module.
    batch = 8
    hidden_size2 = 32

    key = jax.random.PRNGKey(0)
    k_x, k_wr, k_br, k_wt, k_bt = jax.random.split(key, 5)

    # Deterministic parameter init mimicking nn.Linear's U(-1/sqrt(H), 1/sqrt(H)).
    bound = 1.0 / jnp.sqrt(jnp.float32(hidden_size2))
    base_output = jax.random.normal(k_x, (batch, hidden_size2), jnp.float32)
    w_reward = jax.random.uniform(k_wr, (1, hidden_size2), jnp.float32, -bound, bound)
    b_reward = jax.random.uniform(k_br, (1,), jnp.float32, -bound, bound)
    w_rating = jax.random.uniform(k_wt, (1, hidden_size2), jnp.float32, -bound, bound)
    b_rating = jax.random.uniform(k_bt, (1,), jnp.float32, -bound, bound)

    value_reward, value_rating = critic_forward(
        base_output, w_reward, b_reward, w_rating, b_rating
    )
    jax.block_until_ready((value_reward, value_rating))

    # Reference check (plain JAX) for correctness.
    ref_reward = base_output @ w_reward.T + b_reward
    ref_rating = base_output @ w_rating.T + b_rating
    assert value_reward.shape == (batch, 1) and value_rating.shape == (batch, 1)
    assert jnp.allclose(value_reward, ref_reward, atol=1e-5, rtol=1e-5)
    assert jnp.allclose(value_rating, ref_rating, atol=1e-5, rtol=1e-5)

    print("KERNEL_OK")
</pallas_src>

<mosaic_0001>
module attributes {stable_mosaic.version = 11 : i64} {
  func.func @_critic_kernel(%arg0: i32, %arg1: memref<8x32xf32, #tpu.memory_space<vmem>>, %arg2: memref<32x2xf32, #tpu.memory_space<vmem>>, %arg3: memref<2xf32, #tpu.memory_space<smem>>, %arg4: memref<8x2xf32, #tpu.memory_space<vmem>>) attributes {dimension_semantics = [#tpu.dimension_semantics<parallel>], iteration_bounds = array<i64: 1>, scalar_prefetch = 0 : i64, scratch_operands = 0 : i64, tpu.core_type = #tpu.core_type<tc>, window_params = [{transform_indices = @transform_0, window_bounds = array<i64: 8, 32>}, {pipeline_mode = #tpu.pipeline_mode<synchronous>, transform_indices = @transform_1, window_bounds = array<i64: 32, 2>}, {transform_indices = @transform_2, window_bounds = array<i64: 2>}, {transform_indices = @transform_3, window_bounds = array<i64: 8, 2>}]} {
    %c0 = arith.constant 0 : index
    %c0_0 = arith.constant 0 : index
    %0 = vector.load %arg1[%c0, %c0_0] : memref<8x32xf32, #tpu.memory_space<vmem>>, vector<8x32xf32>
    %c0_1 = arith.constant 0 : index
    %c0_2 = arith.constant 0 : index
    %1 = vector.load %arg2[%c0_1, %c0_2] : memref<32x2xf32, #tpu.memory_space<vmem>>, vector<32x2xf32>
    %cst = arith.constant dense<0.000000e+00> : vector<8x2xf32>
    %2 = tpu.matmul %0, %1, %cst {dimension_numbers = #tpu.dot_dimension_numbers<[1], [0], [0], [1], [0, 0, 1, 1], [], []>} : vector<8x32xf32>, vector<32x2xf32>, vector<8x2xf32> -> vector<8x2xf32>
    %c0_3 = arith.constant 0 : index
    %3 = memref.load %arg3[%c0_3] : memref<2xf32, #tpu.memory_space<smem>>
    %c1 = arith.constant 1 : index
    %4 = memref.load %arg3[%c1] : memref<2xf32, #tpu.memory_space<smem>>
    %5 = tpu.iota {dimensions = array<i32: 1>} : vector<8x2xi32>
    %c0_i32 = arith.constant 0 : i32
    %6 = vector.broadcast %c0_i32 : i32 to vector<8x2xi32>
    %7 = arith.cmpi eq, %5, %6 : vector<8x2xi32>
    %8 = vector.broadcast %3 : f32 to vector<8x2xf32>
    %9 = vector.broadcast %4 : f32 to vector<8x2xf32>
    %10 = arith.select %7, %8, %9 : vector<8x2xi1>, vector<8x2xf32>
    %11 = arith.addf %2, %10 : vector<8x2xf32>
    %c0_4 = arith.constant 0 : index
    %c0_5 = arith.constant 0 : index
    %12 = vector.load %arg4[%c0_4, %c0_5] : memref<8x2xf32, #tpu.memory_space<vmem>>, vector<8x2xf32>
    tpu.vector_store %arg4[%c0_4, %c0_5], %11 {strides = array<i32>} : memref<8x2xf32, #tpu.memory_space<vmem>>, vector<8x2xf32>,
    return
  }
  func.func @transform_0(%arg0: i32) -> (i32, i32) {
    %c0_i32 = arith.constant 0 : i32
    %c0_i32_0 = arith.constant 0 : i32
    return %arg0, %c0_i32 : i32, i32
  }
  func.func @transform_1(%arg0: i32) -> (i32, i32) {
    %c0_i32 = arith.constant 0 : i32
    %c0_i32_0 = arith.constant 0 : i32
    %c0_i32_1 = arith.constant 0 : i32
    return %c0_i32, %c0_i32_0 : i32, i32
  }
  func.func @transform_2(%arg0: i32) -> i32 {
    %c0_i32 = arith.constant 0 : i32
    %c0_i32_0 = arith.constant 0 : i32
    return %c0_i32 : i32
  }
  func.func @transform_3(%arg0: i32) -> (i32, i32) {
    %c0_i32 = arith.constant 0 : i32
    %c0_i32_0 = arith.constant 0 : i32
    return %arg0, %c0_i32 : i32, i32
  }
}

</mosaic_0001>

<bundles_post_ra>
// kernel: tpu_custom_call.1
= control target key start
LH: loop header
LB: loop body
LE: loop exit
PB: predicated region body
PF: predicated region fallthrough
CT: control target
= control target key end

     0   :  { %8 = vsyncpa [#allocation3], 0  ;;  %s208_s0 = inlined_call_operand.vmem [shape: f32[8,32], index: 0, kind: input, shape index: {}]   ;;  %s209_s1 = inlined_call_operand.vmem [shape: f32[32,2], index: 1, kind: input, shape index: {}]   ;;  %s210_s2 = inlined_call_operand.vmem [shape: f32[2], index: 2, kind: input, shape index: {}]   ;;  %s211_s3 = inlined_call_operand.vmem [shape: f32[8,2], index: 3, kind: output, shape index: {}]  }
   0x1   :  { %s19_s14 = sshll.u32 %s210_s2, 4  ;;  %s20_s14 = int_to_ptr.vmem [resolvable:$true] %s19_s14 }
   0x2   :  { %s149_s15 = scalar_lea.vmem %s20_s14, 16  ;;  %p154_p1 = scmp.lt.s32.totalorder %s20_s14, %s20_s14 }
   0x3   :  { %p150_p0 = scmp.ne.s32.totalorder %s20_s14, %s149_s15  ;;  %p155_p2 = scmp.lt.s32.totalorder %s149_s15, %s149_s15 }
   0x5   :  { %p156_p3 = por %p155_p2, %p154_p1 }
   0x7   :  { %p157_p4 = pnand %p156_p3, %p150_p0 }
   0x9   :  { %160 = shalt.err (!%p157_p4)
}
   0xa   :  { %s163_s16 = smov [#allocation2]  }
   0xb   :  { %22 = dma.vmem_to_smem %s20_s14, 16, %s163_s16, [#allocation3]  }
   0xc   :  { %161 = dma.done.wait [#allocation3], 16  }
   0xd   :  { %162 = vsyncadd [#allocation3], 4294967280 }
   0xe   :  { %26 = sfence }
   0xf   :  { %v28_v0 = vld [vmem:[%s209_s1] sm:$0xff]  ;;  %v29_v1 = vld [vmem:[%s209_s1 + $0x8] sm:$0xff]  ;;  %v30_v2 = vld [vmem:[%s209_s1 + $0x10] sm:$0xff]  ;;  %v164_v3 = vmov 0.0|0.0   ;;  %vm165_vm0 = vmmov 0   ;;  %v166_v6 = vmov 0.0   ;;  %v34_v9 = vlaneseq }
  0x10   :  { %139 = vmatprep.subr.bf16.mxu0 %v164_v3  ;;  %v140_v4 = vpack.c.bf16 %v29_v1, %v28_v0  ;;  %v31_v5 = vld [vmem:[%s209_s1 + $0x18] sm:$0xff]  ;;  %136 = vmatprep.mubr.msk.f32.mxu0 %vm165_vm0, %v166_v6  ;;  %v27_v8 = vld [vmem:[%s208_s0] sm:$0xff]  ;;  %vm40_vm1 = vcmask 261120   ;;  %s32_s26 = sld [smem:[#allocation2]]  ;;  %s121_s27 = sld [smem:[#allocation2 + $0x1]]  ;;  %vm114_vm3 = vcmask 15360  }
  0x11   :  { %v143_v7 = vpack.c.bf16 %v31_v5, %v30_v2  ;;  %v35_v10 = vand.u32 127, %v34_v9 }
  0x12   :  { %141 = vmatpush3.bf16.msra.mxu0 %v140_v4 }
  0x13   :  { %142 = vmatprep.subr.bf16.mxu0 %v164_v3  ;;  %vm36_vm2 = vcmp.eq.s32.totalorder %v35_v10, 0 }
  0x16   :  { %144 = vmatpush3.bf16.msra.mxu0 %v143_v7  ;;  %v37_v11 = vstv %s32_s26  ;;  %v38_v12 = vstv %s121_s27 }
  0x17   :  { %v39_v13 = vsel %vm36_vm2, %v37_v11, %v38_v12 }
  0x19   :  { %137 = vmatmul.mubr.msk.f32.vlgmr.msra.gmra.mrb[0].mxu0 %vm40_vm1, %v27_v8 }
  0xec   :  { %v110_v14 = vpop.f32.mrb[0].mxu0 }
  0xed   :  { %v111_v15 = vadd.f32 %v110_v14, %v39_v13  ;;  %v138_v16 = vpop.f32.mrb[1].mxu0 }
  0xef   :  { %115 = vst.msk [vmem:[%s211_s3] sm:$0xff] %vm114_vm3, %v111_v15 }
  0xf0   :  { %120 = vsyncpa [#allocation3], 1 }

</bundles_post_ra>
